<compile_context>
chip_gen: v6e
topology: v6e:2x2x1
jax: 0.10.0
libtpu: 0.0.40
codegen_flags: <defaults>
</compile_context>

<pallas_src>
import jax
import jax.numpy as jnp
from jax.experimental import pallas as pl
from jax.experimental.pallas import tpu as pltpu


def _round_up(x, m):
    return (x + m - 1) // m * m


def _cdiv(a, b):
    return (a + b - 1) // b


# ---------------------------------------------------------------------------
# Kernels
# ---------------------------------------------------------------------------

def _ffn_kernel_resident(x_ref, w1_ref, b1_ref, w2_ref, b2_ref, o_ref):
    """Weights fully VMEM-resident. grid = (row_tiles,).  Weights/biases have
    constant index_maps so they are DMA'd once per call; no accumulator."""
    h = jnp.dot(x_ref[...], w1_ref[...], preferred_element_type=jnp.float32)
    h = jnp.maximum(h + b1_ref[...], 0.0)                      # bias+ReLU in f32
    y = jnp.dot(h.astype(w2_ref.dtype), w2_ref[...],
                preferred_element_type=jnp.float32)
    o_ref[...] = (y + b2_ref[...]).astype(o_ref.dtype)


def _ffn_kernel_stream_f32out(x_ref, w1_ref, b1_ref, w2_ref, b2_ref, o_ref):
    """d_ff streamed on grid axis 1 ("arbitrary").  The f32 output block
    doubles as the accumulator (its block index ignores j, so it stays
    VMEM-resident across the reduction) -> no scratch buffer."""
    j = pl.program_id(1)

    @pl.when(j == 0)
    def _():
        o_ref[...] = jnp.zeros_like(o_ref)

    h = jnp.dot(x_ref[...], w1_ref[...], preferred_element_type=jnp.float32)
    h = jnp.maximum(h + b1_ref[...], 0.0)
    o_ref[...] += jnp.dot(h.astype(w2_ref.dtype), w2_ref[...],
                          preferred_element_type=jnp.float32)

    @pl.when(j == pl.num_programs(1) - 1)
    def _():
        o_ref[...] += b2_ref[...]


def _ffn_kernel_stream_acc(x_ref, w1_ref, b1_ref, w2_ref, b2_ref, o_ref,
                           acc_ref):
    """Streamed d_ff with an explicit f32 VMEM accumulator (non-f32 output)."""
    j = pl.program_id(1)

    @pl.when(j == 0)
    def _():
        acc_ref[...] = jnp.zeros_like(acc_ref)

    h = jnp.dot(x_ref[...], w1_ref[...], preferred_element_type=jnp.float32)
    h = jnp.maximum(h + b1_ref[...], 0.0)
    acc_ref[...] += jnp.dot(h.astype(w2_ref.dtype), w2_ref[...],
                            preferred_element_type=jnp.float32)

    @pl.when(j == pl.num_programs(1) - 1)
    def _():
        o_ref[...] = (acc_ref[...] + b2_ref[...]).astype(o_ref.dtype)


# ---------------------------------------------------------------------------
# Planning helpers
# ---------------------------------------------------------------------------

_TM_CANDIDATES = (1024, 768, 512, 384, 256, 128, 64, 32, 16, 8)
_TFF_CANDIDATES = (2048, 1024, 512, 256, 128)


def _vmem_budget_bytes(max_vmem_bytes=None):
    """Per-generation VMEM budget with ~25% headroom for Mosaic scratch."""
    if max_vmem_bytes is not None:
        return int(max_vmem_bytes)
    cap = 64 << 20  # conservative fallback: v7x per-TensorCore physical VMEM
    try:
        info = pltpu.get_tpu_info()
        cap = int(getattr(info, "vmem_capacity_bytes", cap) or cap)
    except Exception:
        pass
    return (cap * 3) // 4


def _plan_tiles(M, d_model_p, d_ff, in_isz, out_isz, budget, *,
                force_streamed, need_acc, tm_override, tff_override):
    """Pick (mode, tm, tff).  Prefers weights-resident; otherwise streams d_ff
    with the largest (tm, tff) that fits the VMEM budget."""
    tm_max = _round_up(M, 8)
    d_ff_128 = _round_up(d_ff, 128)
    bias_bytes = 4 * (2 * d_ff_128 + 2 * d_model_p)

    def resident_fp(t):
        return (2 * 2 * d_model_p * d_ff_128 * in_isz       # W1 + W2 (x2 buffers, conservative)
                + 2 * t * d_model_p * in_isz                 # x tile, double buffered
                + 2 * t * d_model_p * out_isz                # out tile
                + t * d_ff_128 * (4 + in_isz)                # hidden intermediate (f32 + cast)
                + bias_bytes)

    def stream_fp(t, f):
        return (2 * 2 * d_model_p * f * in_isz               # streamed W1/W2 tiles, double buffered
                + 2 * t * d_model_p * in_isz
                + 2 * t * d_model_p * out_isz
                + (t * d_model_p * 4 if need_acc else 0)     # f32 accumulator scratch
                + t * f * (4 + in_isz)                       # hidden intermediate
                + bias_bytes)

    if tm_override is not None:
        tm_cands = [min(_round_up(int(tm_override), 8), tm_max)]
    else:
        tm_cands = sorted({min(c, tm_max) for c in _TM_CANDIDATES}, reverse=True)
    if tff_override is not None:
        tff_cands = [min(_round_up(int(tff_override), 128), d_ff_128)]
    else:
        tff_cands = sorted({min(c, d_ff_128) for c in _TFF_CANDIDATES},
                           reverse=True)

    resident_tm = None
    if not force_streamed:
        for t in tm_cands:
            if resident_fp(t) <= budget:
                resident_tm = t
                break

    stream_tm = stream_tff = None
    for t in tm_cands:
        for f in tff_cands:
            if stream_fp(t, f) <= budget:
                stream_tm, stream_tff = t, f
                break
        if stream_tm is not None:
            break

    if resident_tm is not None and (stream_tm is None or resident_tm >= stream_tm):
        mode, tm, tff = "resident", resident_tm, d_ff_128
    elif stream_tm is not None:
        mode, tm, tff = "streamed", stream_tm, stream_tff
    else:
        # Nothing fits cleanly; fall back to smallest streamed tiles.
        mode, tm, tff = "streamed", tm_cands[-1], tff_cands[-1]

    # v7x has 2 TensorCores: give the parallel row axis >= 2 tiles when there
    # are enough rows to keep both cores past the MXU-roofline threshold.
    # TODO(synk): for tiny-M decode shapes, shard d_ff across the two v7x
    # TensorCores (per-core partial accumulators + final add) instead.
    if tm_override is None and _cdiv(M, tm) == 1 and M >= 1024:
        tm = _round_up(_cdiv(M, 2), 8)

    return mode, tm, tff


def _pad_cols_2d(a, rows_p, cols_p, dtype):
    a = a.astype(dtype)
    r, c = a.shape
    if r == rows_p and c == cols_p:
        return a
    return jnp.zeros((rows_p, cols_p), dtype).at[:r, :c].set(a)


def _pad_bias(v, cols_p):
    v = v.astype(jnp.float32).reshape(1, -1)
    if v.shape[1] == cols_p:
        return v
    return jnp.zeros((1, cols_p), jnp.float32).at[:, :v.shape[1]].set(v)


# ---------------------------------------------------------------------------
# Public wrapper
# ---------------------------------------------------------------------------

def position_wise_feed_forward(x, w1, b1, w2, b2, *, compute_dtype=None,
                               tm=None, tff=None, max_vmem_bytes=None,
                               force_streamed=False):
    """y = relu(x @ w1 + b1) @ w2 + b2   (== fc2(relu(fc1(x)))).

    x:  (B, S, d_model)
    w1: (d_model, d_ff)  [= torch fc1.weight.T]    b1: (d_ff,)
    w2: (d_ff, d_model)  [= torch fc2.weight.T]    b2: (d_model,)

    compute_dtype: dtype fed to the MXU for x / W1 / W2 / intermediate
      (use jnp.bfloat16 on v5e/v6e/v7x for peak MXU throughput).  Biases,
      ReLU and accumulation stay in float32.  Defaults to x.dtype so the exact
      semantics of the PyTorch module are preserved by default.
    """
    B, S, d_model = x.shape
    d_ff = w1.shape[1]
    out_dtype = jnp.dtype(x.dtype)
    compute_dtype = jnp.dtype(compute_dtype) if compute_dtype is not None else out_dtype
    in_isz = compute_dtype.itemsize
    out_isz = out_dtype.itemsize

    M = B * S
    d_model_p = _round_up(d_model, 128)       # lane-dense feature / output axis
    need_acc_scratch = out_dtype != jnp.dtype(jnp.float32)

    budget = _vmem_budget_bytes(max_vmem_bytes)
    mode, tm_sel, tff_sel = _plan_tiles(
        M, d_model_p, d_ff, in_isz, out_isz, budget,
        force_streamed=force_streamed, need_acc=need_acc_scratch,
        tm_override=tm, tff_override=tff)

    d_ff_p = _round_up(d_ff, 128) if mode == "resident" else _round_up(d_ff, tff_sel)

    # Operand prep: all of these are no-ops when shapes/dtypes already match
    # (e.g. d_model % 128 == 0).  Rows are never padded — the ragged row edge
    # is handled by the cdiv grid and masked output writes.
    x2 = _pad_cols_2d(x.reshape(M, d_model), M, d_model_p, compute_dtype)
    w1_p = _pad_cols_2d(w1, d_model_p, d_ff_p, compute_dtype)
    w2_p = _pad_cols_2d(w2, d_ff_p, d_model_p, compute_dtype)
    b1_p = _pad_bias(b1, d_ff_p)
    b2_p = _pad_bias(b2, d_model_p)

    n_row_tiles = _cdiv(M, tm_sel)
    w_streams = 1 if mode == "resident" else n_row_tiles
    w_bytes = 2 * d_model_p * d_ff_p * in_isz
    cost = pl.CostEstimate(
        flops=4 * M * d_model * d_ff, transcendentals=0,
        bytes_accessed=int(M * d_model_p * in_isz
                           + M * d_model_p * out_isz
                           + w_bytes * w_streams
                           + 4 * (d_ff_p + d_model_p) * w_streams))

    vmem_limit = max(int(budget), 32 << 20)

    if mode == "resident":
        grid = (n_row_tiles,)
        in_specs = [
            pl.BlockSpec((tm_sel, d_model_p), lambda i: (i, 0)),     # x rows
            pl.BlockSpec((d_model_p, d_ff_p), lambda i: (0, 0)),     # W1 (resident)
            pl.BlockSpec((1, d_ff_p), lambda i: (0, 0)),             # b1
            pl.BlockSpec((d_ff_p, d_model_p), lambda i: (0, 0)),     # W2 (resident)
            pl.BlockSpec((1, d_model_p), lambda i: (0, 0)),          # b2
        ]
        out_specs = pl.BlockSpec((tm_sel, d_model_p), lambda i: (i, 0))
        scratch_shapes = []
        kernel = _ffn_kernel_resident
        dims = ("parallel",)
    else:
        grid = (n_row_tiles, d_ff_p // tff_sel)   # d_ff reduction last
        in_specs = [
            pl.BlockSpec((tm_sel, d_model_p), lambda i, j: (i, 0)),  # x rows
            pl.BlockSpec((d_model_p, tff_sel), lambda i, j: (0, j)), # W1 tile
            pl.BlockSpec((1, tff_sel), lambda i, j: (0, j)),         # b1 tile
            pl.BlockSpec((tff_sel, d_model_p), lambda i, j: (j, 0)), # W2 tile
            pl.BlockSpec((1, d_model_p), lambda i, j: (0, 0)),       # b2
        ]
        out_specs = pl.BlockSpec((tm_sel, d_model_p), lambda i, j: (i, 0))
        if need_acc_scratch:
            scratch_shapes = [pltpu.VMEM((tm_sel, d_model_p), jnp.float32)]
            kernel = _ffn_kernel_stream_acc
        else:
            scratch_shapes = []
            kernel = _ffn_kernel_stream_f32out
        dims = ("parallel", "arbitrary")

    out = pl.pallas_call(
        kernel,
        out_shape=jax.ShapeDtypeStruct((M, d_model_p), out_dtype),
        grid_spec=pltpu.PrefetchScalarGridSpec(
            num_scalar_prefetch=0,
            grid=grid,
            in_specs=in_specs,
            out_specs=out_specs,
            scratch_shapes=scratch_shapes,
        ),
        compiler_params=pltpu.CompilerParams(
            dimension_semantics=dims,
            vmem_limit_bytes=vmem_limit),
        cost_estimate=cost,
    )(x2, w1_p, b1_p, w2_p, b2_p)

    if d_model_p != d_model:
        out = out[:, :d_model]
    return out.reshape(B, S, d_model)


# ---------------------------------------------------------------------------
# Demo / self-test
# ---------------------------------------------------------------------------

if __name__ == "__main__":
    B, S, d_model, d_ff = 2, 8, 32, 64

    key = jax.random.PRNGKey(0)
    kx, k1, kb1, k2, kb2, k3, kb3, k4, kb4 = jax.random.split(key, 9)

    x = jax.random.normal(kx, (B, S, d_model), dtype=jnp.float32)

    def linear_params(kw, kb, fan_in, fan_out):
        # torch nn.Linear stores weight as (out, in); we materialize W.T so
        # the kernel computes y = x @ W.T + b, matching fc(x).
        bound = 1.0 / (fan_in ** 0.5)
        w_t = jax.random.uniform(kw, (fan_in, fan_out), minval=-bound,
                                 maxval=bound, dtype=jnp.float32)
        b = jax.random.uniform(kb, (fan_out,), minval=-bound, maxval=bound,
                               dtype=jnp.float32)
        return w_t, b

    w1_t, b1 = linear_params(k1, kb1, d_model, d_ff)
    w2_t, b2 = linear_params(k2, kb2, d_ff, d_model)

    def ref_fn(xv, a, ab, c, cb):
        return jnp.maximum(xv @ a + ab, 0.0) @ c + cb

    ref = ref_fn(x, w1_t, b1, w2_t, b2)

    # 1) Weights-resident fast path, exact f32 MXU operands.
    y = jax.block_until_ready(position_wise_feed_forward(x, w1_t, b1, w2_t, b2))
    assert y.shape == (B, S, d_model)
    assert jnp.allclose(y, ref, atol=1e-5, rtol=1e-5)

    # 2) Production path: bf16 MXU operands, f32 accumulation.
    y_bf16 = jax.block_until_ready(
        position_wise_feed_forward(x, w1_t, b1, w2_t, b2,
                                   compute_dtype=jnp.bfloat16))
    assert jnp.allclose(y_bf16, ref, atol=5e-2, rtol=5e-2)

    # 3) Streamed-d_ff path (multi-step reduction; f32 output block used
    #    directly as the accumulator).  Larger d_ff + tff=128 -> 2 steps.
    d_ff2 = 256
    w1b, b1b = linear_params(k3, kb3, d_model, d_ff2)
    w2b, b2b = linear_params(k4, kb4, d_ff2, d_model)
    ref2 = ref_fn(x, w1b, b1b, w2b, b2b)
    y2 = jax.block_until_ready(
        position_wise_feed_forward(x, w1b, b1b, w2b, b2b,
                                   force_streamed=True, tff=128))
    assert jnp.allclose(y2, ref2, atol=1e-5, rtol=1e-5)

    # 4) Streamed path with non-f32 output (exercises the f32 scratch
    #    accumulator variant).
    x_b = x.astype(jnp.bfloat16)
    ref3 = ref_fn(x_b.astype(jnp.float32), w1b, b1b, w2b, b2b)
    y3 = jax.block_until_ready(
        position_wise_feed_forward(x_b, w1b, b1b, w2b, b2b,
                                   force_streamed=True, tff=128))
    assert y3.dtype == jnp.bfloat16
    assert jnp.allclose(y3.astype(jnp.float32), ref3, atol=1e-1, rtol=1e-1)

    print("KERNEL_OK")
</pallas_src>

<mosaic_0001>
module attributes {stable_mosaic.version = 11 : i64} {
  func.func @_ffn_kernel_resident(%arg0: i32, %arg1: memref<16x128xf32, #tpu.memory_space<vmem>>, %arg2: memref<128x128xf32, #tpu.memory_space<vmem>>, %arg3: memref<1x128xf32, #tpu.memory_space<vmem>>, %arg4: memref<128x128xf32, #tpu.memory_space<vmem>>, %arg5: memref<1x128xf32, #tpu.memory_space<vmem>>, %arg6: memref<16x128xf32, #tpu.memory_space<vmem>>) attributes {dimension_semantics = [#tpu.dimension_semantics<parallel>], iteration_bounds = array<i64: 1>, scalar_prefetch = 0 : i64, scratch_operands = 0 : i64, tpu.core_type = #tpu.core_type<tc>, window_params = [{transform_indices = @transform_0, window_bounds = array<i64: 16, 128>}, {pipeline_mode = #tpu.pipeline_mode<synchronous>, transform_indices = @transform_1, window_bounds = array<i64: 128, 128>}, {pipeline_mode = #tpu.pipeline_mode<synchronous>, transform_indices = @transform_2, window_bounds = array<i64: 1, 128>}, {pipeline_mode = #tpu.pipeline_mode<synchronous>, transform_indices = @transform_3, window_bounds = array<i64: 128, 128>}, {pipeline_mode = #tpu.pipeline_mode<synchronous>, transform_indices = @transform_4, window_bounds = array<i64: 1, 128>}, {transform_indices = @transform_5, window_bounds = array<i64: 16, 128>}]} {
    %c0 = arith.constant 0 : index
    %c0_0 = arith.constant 0 : index
    %0 = vector.load %arg1[%c0, %c0_0] : memref<16x128xf32, #tpu.memory_space<vmem>>, vector<16x128xf32>
    %c0_1 = arith.constant 0 : index
    %c0_2 = arith.constant 0 : index
    %1 = vector.load %arg2[%c0_1, %c0_2] : memref<128x128xf32, #tpu.memory_space<vmem>>, vector<128x128xf32>
    %cst = arith.constant dense<0.000000e+00> : vector<16x128xf32>
    %2 = tpu.matmul %0, %1, %cst {dimension_numbers = #tpu.dot_dimension_numbers<[1], [0], [0], [1], [0, 0, 1, 1], [], []>} : vector<16x128xf32>, vector<128x128xf32>, vector<16x128xf32> -> vector<16x128xf32>
    %c0_3 = arith.constant 0 : index
    %c0_4 = arith.constant 0 : index
    %3 = vector.load %arg3[%c0_3, %c0_4] : memref<1x128xf32, #tpu.memory_space<vmem>>, vector<1x128xf32>
    %4 = vector.broadcast %3 : vector<1x128xf32> to vector<16x128xf32>
    %5 = arith.addf %2, %4 : vector<16x128xf32>
    %cst_5 = arith.constant 0.000000e+00 : f32
    %6 = vector.broadcast %cst_5 : f32 to vector<16x128xf32>
    %7 = arith.maximumf %5, %6 : vector<16x128xf32>
    %c0_6 = arith.constant 0 : index
    %c0_7 = arith.constant 0 : index
    %8 = vector.load %arg4[%c0_6, %c0_7] : memref<128x128xf32, #tpu.memory_space<vmem>>, vector<128x128xf32>
    %cst_8 = arith.constant dense<0.000000e+00> : vector<16x128xf32>
    %9 = tpu.matmul %7, %8, %cst_8 {dimension_numbers = #tpu.dot_dimension_numbers<[1], [0], [0], [1], [0, 0, 1, 1], [], []>} : vector<16x128xf32>, vector<128x128xf32>, vector<16x128xf32> -> vector<16x128xf32>
    %c0_9 = arith.constant 0 : index
    %c0_10 = arith.constant 0 : index
    %10 = vector.load %arg5[%c0_9, %c0_10] : memref<1x128xf32, #tpu.memory_space<vmem>>, vector<1x128xf32>
    %11 = vector.broadcast %10 : vector<1x128xf32> to vector<16x128xf32>
    %12 = arith.addf %9, %11 : vector<16x128xf32>
    %c0_11 = arith.constant 0 : index
    %c0_12 = arith.constant 0 : index
    %13 = vector.load %arg6[%c0_11, %c0_12] : memref<16x128xf32, #tpu.memory_space<vmem>>, vector<16x128xf32>
    tpu.vector_store %arg6[%c0_11, %c0_12], %12 {strides = array<i32>} : memref<16x128xf32, #tpu.memory_space<vmem>>, vector<16x128xf32>,
    return
  }
  func.func @transform_0(%arg0: i32) -> (i32, i32) {
    %c0_i32 = arith.constant 0 : i32
    %c0_i32_0 = arith.constant 0 : i32
    return %arg0, %c0_i32 : i32, i32
  }
  func.func @transform_1(%arg0: i32) -> (i32, i32) {
    %c0_i32 = arith.constant 0 : i32
    %c0_i32_0 = arith.constant 0 : i32
    %c0_i32_1 = arith.constant 0 : i32
    return %c0_i32, %c0_i32_0 : i32, i32
  }
  func.func @transform_2(%arg0: i32) -> (i32, i32) {
    %c0_i32 = arith.constant 0 : i32
    %c0_i32_0 = arith.constant 0 : i32
    %c0_i32_1 = arith.constant 0 : i32
    return %c0_i32, %c0_i32_0 : i32, i32
  }
  func.func @transform_3(%arg0: i32) -> (i32, i32) {
    %c0_i32 = arith.constant 0 : i32
    %c0_i32_0 = arith.constant 0 : i32
    %c0_i32_1 = arith.constant 0 : i32
    return %c0_i32, %c0_i32_0 : i32, i32
  }
  func.func @transform_4(%arg0: i32) -> (i32, i32) {
    %c0_i32 = arith.constant 0 : i32
    %c0_i32_0 = arith.constant 0 : i32
    %c0_i32_1 = arith.constant 0 : i32
    return %c0_i32, %c0_i32_0 : i32, i32
  }
  func.func @transform_5(%arg0: i32) -> (i32, i32) {
    %c0_i32 = arith.constant 0 : i32
    %c0_i32_0 = arith.constant 0 : i32
    return %arg0, %c0_i32 : i32, i32
  }
}

</mosaic_0001>

<bundles_post_ra>
// kernel: tpu_custom_call.1
= control target key start
LH: loop header
LB: loop body
LE: loop exit
PB: predicated region body
PF: predicated region fallthrough
CT: control target
= control target key end

     0   :  { %10 = vsyncpa [#allocation3], 0  ;;  %s548_s0 = inlined_call_operand.hbm [shape: f32[16,128], index: 0, kind: input, shape index: {}]   ;;  %s549_s1 = inlined_call_operand.hbm [shape: f32[128,128], index: 1, kind: input, shape index: {}]   ;;  %s550_s2 = inlined_call_operand.vmem [shape: f32[1,128], index: 2, kind: input, shape index: {}]   ;;  %s551_s3 = inlined_call_operand.hbm [shape: f32[128,128], index: 3, kind: input, shape index: {}]   ;;  %s552_s4 = inlined_call_operand.vmem [shape: f32[1,128], index: 4, kind: input, shape index: {}]   ;;  %s553_s5 = inlined_call_operand.hbm [shape: f32[16,128], index: 5, kind: output, shape index: {}]  }
   0x1   :  { %11 = vsyncpa [#allocation6], 0 }
   0x2   :  { %12 = vsyncpa [#allocation4], 0  ;;  %s482_s18 = smov [#allocation5]   ;;  %s483_s20 = smov [#allocation2]  }
   0x3   :  { %s30_s19 = sshll.u32 %s482_s18, 4  ;;  %s18_s21 = sshll.u32 %s483_s20, 4  ;;  %s31_s19 = int_to_ptr.vmem [resolvable:$true] %s30_s19  ;;  %s19_s21 = int_to_ptr.vmem [resolvable:$true] %s18_s21 }
   0x4   :  { %s404_s22 = scalar_lea.vmem %s31_s19, 2048  ;;  %p409_p1 = scmp.lt.s32.totalorder %s31_s19, %s31_s19 }
   0x5   :  { %p405_p0 = scmp.ne.s32.totalorder %s31_s19, %s404_s22  ;;  %p410_p2 = scmp.lt.s32.totalorder %s404_s22, %s404_s22 }
   0x7   :  { %p411_p3 = por %p410_p2, %p409_p1 }
   0x9   :  { %p412_p4 = pnand %p411_p3, %p405_p0 }
   0xb   :  { %415 = shalt.err (!%p412_p4)
}
   0xc   :  { %s484_s23 = smov 128   ;;  %s485_s24 = smov 8  }
   0xd   :  { %36 = dma.hbm_to_vmem [thread:$0]  %s549_s1, 2048, %s31_s19, [#allocation6], %s484_s23, %s484_s23, %s485_s24  }
   0xe   :  { %s424_s27 = scalar_lea.vmem %s19_s21, 256  ;;  %p429_p6 = scmp.lt.s32.totalorder %s19_s21, %s19_s21 }
   0xf   :  { %p425_p5 = scmp.ne.s32.totalorder %s19_s21, %s424_s27  ;;  %p430_p7 = scmp.lt.s32.totalorder %s424_s27, %s424_s27 }
  0x11   :  { %p431_p8 = por %p430_p7, %p429_p6 }
  0x13   :  { %p432_p9 = pnand %p431_p8, %p425_p5 }
  0x15   :  { %435 = shalt.err (!%p432_p9)
}
  0x16   :  { %24 = dma.hbm_to_vmem [thread:$0]  %s548_s0, 256, %s19_s21, [#allocation3], %s484_s23, %s484_s23, %s485_s24  }
  0x17   :  { %s486_s30 = smov [#allocation7]  }
  0x18   :  { %s44_s6 = sshll.u32 %s486_s30, 4  ;;  %s45_s6 = int_to_ptr.vmem [resolvable:$true] %s44_s6 }
  0x19   :  { %s444_s7 = scalar_lea.vmem %s45_s6, 2048  ;;  %p449_p11 = scmp.lt.s32.totalorder %s45_s6, %s45_s6 }
  0x1a   :  { %p445_p10 = scmp.ne.s32.totalorder %s45_s6, %s444_s7  ;;  %p450_p12 = scmp.lt.s32.totalorder %s444_s7, %s444_s7 }
  0x1c   :  { %p451_p13 = por %p450_p12, %p449_p11 }
  0x1e   :  { %p452_p0 = pnand %p451_p13, %p445_p10 }
  0x20   :  { %455 = shalt.err (!%p452_p0)
}
  0x21   :  { %50 = dma.hbm_to_vmem [thread:$0]  %s551_s3, 2048, %s45_s6, [#allocation6], %s484_s23, %s484_s23, %s485_s24  }
  0x22   :  { %476 = dma.done.wait [#allocation3], 256  }
  0x23   :  { %477 = vsyncadd [#allocation3], 4294967040 }
  0x24   :  { %478 = dma.done.wait [#allocation6], 4096  }
  0x25   :  { %479 = vsyncadd [#allocation6], 4294963200  ;;  %v79_v0 = vld [vmem:[#allocation5 + $0x78] sm:$0xff]  ;;  %v78_v1 = vld [vmem:[#allocation5 + $0x70] sm:$0xff]  ;;  %s487_s11 = smov [#allocation8]  }
  0x26   :  { %320 = vmatprep.subr.mxu0 %v79_v0  ;;  %v77_v2 = vld [vmem:[#allocation5 + $0x68] sm:$0xff]  ;;  %v76_v3 = vld [vmem:[#allocation5 + $0x60] sm:$0xff]  ;;  %v62_v4 = vld [vmem:[#allocation2] sm:$0xff]  ;;  %s269_s12 = sshll.u32 %s487_s11, 4  ;;  %s270_s12 = int_to_ptr.vmem [resolvable:$true] %s269_s12 }
  0x27   :  { %321 = vmatpush3.msra.mxu0 %v79_v0  ;;  %v75_v5 = vld [vmem:[#allocation5 + $0x58] sm:$0xff]  ;;  %352 = vmatprep.mubr.f32.mxu0 %v62_v4  ;;  %v178_v7 = vld [vmem:[#allocation7 + $0x70] sm:$0xff]  ;;  %v177_v9 = vld [vmem:[#allocation7 + $0x68] sm:$0xff]  ;;  %p461_p2 = scmp.lt.s32.totalorder %s270_s12, %s270_s12 }
  0x28   :  { %322 = vmatprep.subr.mxu0 %v78_v1  ;;  %v179_v6 = vld [vmem:[#allocation7 + $0x78] sm:$0xff]  ;;  %v74_v8 = vld [vmem:[#allocation5 + $0x50] sm:$0xff]  ;;  %v73_v10 = vld [vmem:[#allocation5 + $0x48] sm:$0xff] }
  0x29   :  { %323 = vmatpush3.msra.mxu0 %v78_v1  ;;  %355 = vmatprep.subr.mxu1 %v179_v6  ;;  %v176_v11 = vld [vmem:[#allocation7 + $0x60] sm:$0xff]  ;;  %v175_v13 = vld [vmem:[#allocation7 + $0x58] sm:$0xff]  ;;  %v174_v15 = vld [vmem:[#allocation7 + $0x50] sm:$0xff] }
  0x2a   :  { %324 = vmatprep.subr.mxu0 %v77_v2  ;;  %356 = vmatpush3.msra.mxu1 %v179_v6  ;;  %v72_v12 = vld [vmem:[#allocation5 + $0x40] sm:$0xff]  ;;  %v71_v14 = vld [vmem:[#allocation5 + $0x38] sm:$0xff]  ;;  %v70_v16 = vld [vmem:[#allocation5 + $0x30] sm:$0xff] }
  0x2b   :  { %325 = vmatpush3.msra.mxu0 %v77_v2  ;;  %357 = vmatprep.subr.mxu1 %v178_v7  ;;  %v173_v17 = vld [vmem:[#allocation7 + $0x48] sm:$0xff]  ;;  %v172_v19 = vld [vmem:[#allocation7 + $0x40] sm:$0xff]  ;;  %v171_v21 = vld [vmem:[#allocation7 + $0x38] sm:$0xff] }
  0x2c   :  { %326 = vmatprep.subr.mxu0 %v76_v3  ;;  %358 = vmatpush3.msra.mxu1 %v178_v7  ;;  %v69_v18 = vld [vmem:[#allocation5 + $0x28] sm:$0xff]  ;;  %v68_v20 = vld [vmem:[#allocation5 + $0x20] sm:$0xff]  ;;  %v67_v22 = vld [vmem:[#allocation5 + $0x18] sm:$0xff] }
  0x2d   :  { %327 = vmatpush3.msra.mxu0 %v76_v3  ;;  %359 = vmatprep.subr.mxu1 %v177_v9  ;;  %v170_v23 = vld [vmem:[#allocation7 + $0x30] sm:$0xff]  ;;  %v169_v25 = vld [vmem:[#allocation7 + $0x28] sm:$0xff]  ;;  %v168_v27 = vld [vmem:[#allocation7 + $0x20] sm:$0xff] }
  0x2e   :  { %328 = vmatprep.subr.mxu0 %v75_v5  ;;  %360 = vmatpush3.msra.mxu1 %v177_v9  ;;  %v66_v24 = vld [vmem:[#allocation5 + $0x10] sm:$0xff]  ;;  %v65_v26 = vld [vmem:[#allocation5 + $0x8] sm:$0xff]  ;;  %v64_v28 = vld [vmem:[#allocation5] sm:$0xff] }
  0x2f   :  { %329 = vmatpush3.msra.mxu0 %v75_v5  ;;  %361 = vmatprep.subr.mxu1 %v176_v11  ;;  %v63_v29 = vld [vmem:[#allocation2 + $0x8] sm:$0xff]  ;;  %v166_v31 = vld [vmem:[#allocation7 + $0x10] sm:$0xff]  ;;  %v165_v32 = vld [vmem:[#allocation7 + $0x8] sm:$0xff] }
  0x30   :  { %330 = vmatprep.subr.mxu0 %v74_v8  ;;  %362 = vmatpush3.msra.mxu1 %v176_v11  ;;  %v167_v30 = vld [vmem:[#allocation7 + $0x18] sm:$0xff]  ;;  %v164_v33 = vld [vmem:[#allocation7] sm:$0xff]  ;;  %v282_v34 = vld [vmem:[%s550_s2] ss:$0 sm:$0xff]  ;;  %s456_s2 = scalar_lea.vmem %s270_s12, 256 }
  0x31   :  { %331 = vmatpush3.msra.mxu0 %v74_v8  ;;  %363 = vmatprep.subr.mxu1 %v175_v13  ;;  %v283_v41 = vld [vmem:[%s552_s4] ss:$0 sm:$0xff]  ;;  %p457_p1 = scmp.ne.s32.totalorder %s270_s12, %s456_s2  ;;  %p462_p3 = scmp.lt.s32.totalorder %s456_s2, %s456_s2 }
  0x32   :  { %332 = vmatprep.subr.mxu0 %v73_v10  ;;  %364 = vmatpush3.msra.mxu1 %v175_v13 }
  0x33   :  { %333 = vmatpush3.msra.mxu0 %v73_v10  ;;  %365 = vmatprep.subr.mxu1 %v174_v15  ;;  %p463_p4 = por %p462_p3, %p461_p2 }
  0x34   :  { %334 = vmatprep.subr.mxu0 %v72_v12  ;;  %366 = vmatpush3.msra.mxu1 %v174_v15 }
  0x35   :  { %335 = vmatpush3.msra.mxu0 %v72_v12  ;;  %367 = vmatprep.subr.mxu1 %v173_v17  ;;  %p464_p5 = pnand %p463_p4, %p457_p1 }
  0x36   :  { %336 = vmatprep.subr.mxu0 %v71_v14  ;;  %368 = vmatpush3.msra.mxu1 %v173_v17 }
  0x37   :  { %337 = vmatpush3.msra.mxu0 %v71_v14  ;;  %369 = vmatprep.subr.mxu1 %v172_v19 }
  0x38   :  { %338 = vmatprep.subr.mxu0 %v70_v16  ;;  %370 = vmatpush3.msra.mxu1 %v172_v19 }
  0x39   :  { %339 = vmatpush3.msra.mxu0 %v70_v16  ;;  %371 = vmatprep.subr.mxu1 %v171_v21 }
  0x3a   :  { %340 = vmatprep.subr.mxu0 %v69_v18  ;;  %372 = vmatpush3.msra.mxu1 %v171_v21 }
  0x3b   :  { %341 = vmatpush3.msra.mxu0 %v69_v18  ;;  %373 = vmatprep.subr.mxu1 %v170_v23 }
  0x3c   :  { %342 = vmatprep.subr.mxu0 %v68_v20  ;;  %374 = vmatpush3.msra.mxu1 %v170_v23 }
  0x3d   :  { %343 = vmatpush3.msra.mxu0 %v68_v20  ;;  %375 = vmatprep.subr.mxu1 %v169_v25 }
  0x3e   :  { %344 = vmatprep.subr.mxu0 %v67_v22  ;;  %376 = vmatpush3.msra.mxu1 %v169_v25 }
  0x3f   :  { %345 = vmatpush3.msra.mxu0 %v67_v22  ;;  %377 = vmatprep.subr.mxu1 %v168_v27 }
  0x40   :  { %346 = vmatprep.subr.mxu0 %v66_v24  ;;  %378 = vmatpush3.msra.mxu1 %v168_v27 }
  0x41   :  { %347 = vmatpush3.msra.mxu0 %v66_v24  ;;  %379 = vmatprep.subr.mxu1 %v167_v30 }
  0x42   :  { %348 = vmatprep.subr.mxu0 %v65_v26  ;;  %380 = vmatpush3.msra.mxu1 %v167_v30 }
  0x43   :  { %349 = vmatpush3.msra.mxu0 %v65_v26  ;;  %381 = vmatprep.subr.mxu1 %v166_v31 }
  0x44   :  { %350 = vmatprep.subr.mxu0 %v64_v28  ;;  %382 = vmatpush3.msra.mxu1 %v166_v31 }
  0x45   :  { %351 = vmatpush3.msra.mxu0 %v64_v28  ;;  %383 = vmatprep.subr.mxu1 %v165_v32 }
  0x46   :  { %353 = vmatmul.mubr.f32.vlgmr.msra.gmra.mxu0 %v63_v29  ;;  %384 = vmatpush3.msra.mxu1 %v165_v32 }
  0x47   :  { %385 = vmatprep.subr.mxu1 %v164_v33 }
  0x48   :  { %386 = vmatpush3.msra.mxu1 %v164_v33 }
 0x106   :  { %v354_v35 = vpop.f32.mrf.mxu0 }
 0x107   :  { %v159_v36 = vadd.f32 %v354_v35, %v282_v34 }
 0x108   :  { %v153_v37 = vpop.f32.mrf.mxu0 }
 0x109   :  { %v154_v38 = vadd.f32 %v282_v34, %v153_v37  ;;  %v163_v40 = vmax.f32 %v159_v36, 0.0 }
 0x10b   :  { %v162_v39 = vmax.f32 %v154_v38, 0.0 }
 0x10d   :  { %387 = vmatprep.mubr.f32.mxu1 %v162_v39 }
 0x10e   :  { %388 = vmatmul.mubr.f32.vlgmr.msra.gmra.mxu1 %v163_v40 }
 0x1ce   :  { %v389_v42 = vpop.f32.mrf.mxu1 }
 0x1cf   :  { %v259_v43 = vadd.f32 %v389_v42, %v283_v41 }
 0x1d0   :  { %v253_v44 = vpop.f32.mrf.mxu1 }
 0x1d1   :  { %263 = vst [vmem:[#allocation8 + $0x8] sm:$0xff] %v259_v43  ;;  %v254_v45 = vadd.f32 %v283_v41, %v253_v44 }
 0x1d3   :  { %262 = vst [vmem:[#allocation8] sm:$0xff] %v254_v45 }
 0x1d4   :  { %467 = shalt.err (!%p464_p5)
}
 0x1d5   :  { %275 = dma.vmem_to_hbm [thread:$0]  %s270_s12, 256, %s553_s5, [#allocation4], %s484_s23, %s484_s23, %s485_s24  }
 0x1d6   :  { %480 = dma.done.wait [#allocation4], 256  }
 0x1d7   :  { %481 = vsyncadd [#allocation4], 4294967040 }
 0x1d8   :  { %279 = vsyncpa [#allocation3], 1 }
 0x1d9   :  { %280 = vsyncpa [#allocation6], 1 }
 0x1da   :  { %281 = vsyncpa [#allocation4], 1 }

</bundles_post_ra>
